<compile_context>
chip_gen: v5e
topology: v5e:2x2
jax: 0.10.0
libtpu: 0.0.40
codegen_flags: <defaults>
</compile_context>

<pallas_src>
import functools

import jax
import jax.numpy as jnp
from jax.experimental import pallas as pl
from jax.experimental.pallas import tpu as pltpu

EPS = 1e-5  # PyTorch BatchNorm2d default eps
_HIGHEST = jax.lax.Precision.HIGHEST


def _round_up(x: int, m: int) -> int:
    return (x + m - 1) // m * m


def _vmem_limit_bytes() -> int:
    """Generation-aware scoped-VMEM limit (conservative fallback = 48 MiB)."""
    cap = 64 * 1024 * 1024
    try:
        info = pltpu.get_tpu_info()
        cap = int(getattr(info, "vmem_capacity_bytes", cap))
    except Exception:
        pass
    cap = min(cap, 128 * 1024 * 1024)
    return (cap * 3) // 4


def _make_stats_kernel(TM1, TM2, HW, HW2, need_mask):
    """Per-tile BN statistics: [sum, sum((a - tile_mean)^2)] per channel row."""

    def kernel(x_ref, f_ref, wt_ref, wc_ref, st1_ref, st2_ref):
        # x_ref: (Cin, TM1)   f_ref: (Cf, TM2)   wt_ref: (4*Cout, Cin)   wc_ref: (Cout, Cf)
        # st1_ref: (2, 4*Cout, 1)   st2_ref: (2, Cout, 1)
        a1 = jnp.maximum(jnp.dot(wt_ref[...], x_ref[...], precision=_HIGHEST,
                                 preferred_element_type=jnp.float32), 0.0)
        a2 = jnp.maximum(jnp.dot(wc_ref[...], f_ref[...], precision=_HIGHEST,
                                 preferred_element_type=jnp.float32), 0.0)

        # Padded lanes hold exactly 0 (zero-padded inputs, no bias, relu(0)=0), so the
        # plain lane sums are already exact.
        s1 = jnp.sum(a1, axis=-1, keepdims=True)
        s2 = jnp.sum(a2, axis=-1, keepdims=True)

        if need_mask:
            # Only the last tile of each sample contains padding; mask it out of the
            # centered sum of squares and use the true per-tile element count.
            t = pl.program_id(1)
            v1 = jnp.minimum(TM1, HW - t * TM1)
            v2 = jnp.minimum(TM2, HW2 - t * TM2)
            mean1 = s1 / v1.astype(jnp.float32)
            mean2 = s2 / v2.astype(jnp.float32)
            lane1 = jax.lax.broadcasted_iota(jnp.int32, (1, TM1), 1)
            lane2 = jax.lax.broadcasted_iota(jnp.int32, (1, TM2), 1)
            d1 = jnp.where(lane1 < v1, a1 - mean1, 0.0)
            d2 = jnp.where(lane2 < v2, a2 - mean2, 0.0)
        else:
            d1 = a1 - s1 * (1.0 / TM1)
            d2 = a2 - s2 * (1.0 / TM2)

        # Lane reductions go to the XLU; the MXU/VPU are idle in this pass and the step is
        # DMA-bound for realistic channel counts.
        st1_ref[0] = s1
        st1_ref[1] = jnp.sum(d1 * d1, axis=-1, keepdims=True)
        st2_ref[0] = s2
        st2_ref[1] = jnp.sum(d2 * d2, axis=-1, keepdims=True)

    return kernel


def _norm_kernel(x_ref, f_ref, wt_ref, wc_ref, aff1_ref, aff2_ref, y1_ref, y2_ref):
    """Recompute the tiny-K matmuls and apply the fused BN scale/shift (lane-dense stores)."""
    a1 = jnp.maximum(jnp.dot(wt_ref[...], x_ref[...], precision=_HIGHEST,
                             preferred_element_type=jnp.float32), 0.0)
    a2 = jnp.maximum(jnp.dot(wc_ref[...], f_ref[...], precision=_HIGHEST,
                             preferred_element_type=jnp.float32), 0.0)
    y1_ref[...] = a1 * aff1_ref[0] + aff1_ref[1]
    y2_ref[...] = a2 * aff2_ref[0] + aff2_ref[1]


def unet_up_sample_block(x, features, wt, wc, gamma, beta, *, max_lanes=None):
    """Forward of unetUpSampleBlock (train-mode BN, dp=False).

    x        : (N, Cin, H, W)       NCHW
    features : (N, Cf, 2H, 2W)      NCHW
    wt       : (Cin, Cout, 2, 2)    ConvTranspose2d weight (PyTorch layout)
    wc       : (Cout, Cf, 1, 1)     Conv2d 1x1 weight
    gamma    : (2*Cout,)            BatchNorm weight
    beta     : (2*Cout,)            BatchNorm bias
    returns  : (N, 2*Cout, 2H, 2W)  NCHW
    """
    N, Cin, H, W = x.shape
    Nf, Cf, Hf, Wf = features.shape
    Cout = wt.shape[1]
    assert Nf == N and Hf == 2 * H and Wf == 2 * W
    HW, HW2 = H * W, Hf * Wf  # HW2 == 4 * HW

    # ---- generation-aware tile sizing: double-buffered working set ~ half the VMEM limit ----
    vmem_limit = _vmem_limit_bytes()
    per_lane_bytes = 8 * (Cin + 4 * Cf + 8 * Cout)  # 2 buffers * 4B * (x + f + y1 + y2) per x-lane
    max_tm = max(128, (vmem_limit // 2 // per_lane_bytes) // 128 * 128)
    if max_lanes is not None:
        max_tm = max(128, min(max_tm, (max_lanes // 128) * 128))
    TM1 = min(max_tm, _round_up(HW, 128))
    HW1p = _round_up(HW, TM1)
    T = HW1p // TM1
    TM2, HW2p = 4 * TM1, 4 * HW1p
    need_mask = HW1p != HW

    # ---- layout glue: pure reshapes (+ zero pad) on the big activations, no transposes ----
    x3 = x.reshape(N, Cin, HW)
    f3 = features.reshape(N, Cf, HW2)
    if need_mask:
        x3 = jnp.pad(x3, ((0, 0), (0, 0), (0, HW1p - HW)))
        f3 = jnp.pad(f3, ((0, 0), (0, 0), (0, HW2p - HW2)))
    wt_k = jnp.transpose(wt, (2, 3, 1, 0)).reshape(4 * Cout, Cin)  # row = (ki*2+kj)*Cout + oc
    wc_k = wc[:, :, 0, 0]                                          # (Cout, Cf)

    cp = pltpu.CompilerParams(
        dimension_semantics=("parallel", "parallel"),  # fully independent -> v7x megacore OK
        vmem_limit_bytes=vmem_limit)

    # ---- pass 1: per-tile BN statistics ----
    st1, st2 = pl.pallas_call(
        _make_stats_kernel(TM1, TM2, HW, HW2, need_mask),
        out_shape=(jax.ShapeDtypeStruct((N, T, 2, 4 * Cout, 1), jnp.float32),
                   jax.ShapeDtypeStruct((N, T, 2, Cout, 1), jnp.float32)),
        grid_spec=pltpu.PrefetchScalarGridSpec(
            num_scalar_prefetch=0,
            grid=(N, T),
            in_specs=[
                pl.BlockSpec((None, Cin, TM1), lambda n, t: (n, 0, t)),
                pl.BlockSpec((None, Cf, TM2), lambda n, t: (n, 0, t)),
                pl.BlockSpec((4 * Cout, Cin), lambda n, t: (0, 0)),
                pl.BlockSpec((Cout, Cf), lambda n, t: (0, 0)),
            ],
            out_specs=(
                pl.BlockSpec((None, None, 2, 4 * Cout, 1), lambda n, t: (n, t, 0, 0, 0)),
                pl.BlockSpec((None, None, 2, Cout, 1), lambda n, t: (n, t, 0, 0, 0)),
            )),
        compiler_params=cp,
    )(x3, f3, wt_k, wc_k)

    # ---- stable parallel-variance merge of the per-tile chunks (tiny, plain JAX) ----
    cnt1 = jnp.minimum(TM1, HW - jnp.arange(T) * TM1).astype(jnp.float32)   # valid x-lanes / tile
    count = float(N * HW2)                                                  # elements per BN channel

    s1 = st1[:, :, 0, :, 0].reshape(N, T, 4, Cout)   # chunks = (n, t, subpixel)
    m21 = st1[:, :, 1, :, 0].reshape(N, T, 4, Cout)
    c1 = cnt1[None, :, None, None]
    mean1 = jnp.sum(s1, axis=(0, 1, 2)) / count
    var1 = (jnp.sum(m21, axis=(0, 1, 2))
            + jnp.sum(c1 * (s1 / c1 - mean1) ** 2, axis=(0, 1, 2))) / count

    s2 = st2[:, :, 0, :, 0]                          # chunks = (n, t)
    m22 = st2[:, :, 1, :, 0]
    c2 = 4.0 * cnt1[None, :, None]
    mean2 = jnp.sum(s2, axis=(0, 1)) / count
    var2 = (jnp.sum(m22, axis=(0, 1))
            + jnp.sum(c2 * (s2 / c2 - mean2) ** 2, axis=(0, 1))) / count

    g1, g2 = gamma[:Cout], gamma[Cout:]
    b1, b2 = beta[:Cout], beta[Cout:]
    sc1 = g1 / jnp.sqrt(var1 + EPS)
    sh1 = b1 - mean1 * sc1
    sc2 = g2 / jnp.sqrt(var2 + EPS)
    sh2 = b2 - mean2 * sc2
    aff1 = jnp.stack([jnp.tile(sc1, 4), jnp.tile(sh1, 4)]).reshape(2, 4 * Cout, 1)
    aff2 = jnp.stack([sc2, sh2]).reshape(2, Cout, 1)

    # ---- pass 2: normalize + lane-dense output stores ----
    y1, y2 = pl.pallas_call(
        _norm_kernel,
        out_shape=(jax.ShapeDtypeStruct((N, 4 * Cout, HW1p), jnp.float32),
                   jax.ShapeDtypeStruct((N, Cout, HW2p), jnp.float32)),
        grid_spec=pltpu.PrefetchScalarGridSpec(
            num_scalar_prefetch=0,
            grid=(N, T),
            in_specs=[
                pl.BlockSpec((None, Cin, TM1), lambda n, t: (n, 0, t)),
                pl.BlockSpec((None, Cf, TM2), lambda n, t: (n, 0, t)),
                pl.BlockSpec((4 * Cout, Cin), lambda n, t: (0, 0)),
                pl.BlockSpec((Cout, Cf), lambda n, t: (0, 0)),
                pl.BlockSpec((2, 4 * Cout, 1), lambda n, t: (0, 0, 0)),
                pl.BlockSpec((2, Cout, 1), lambda n, t: (0, 0, 0)),
            ],
            out_specs=(
                pl.BlockSpec((None, 4 * Cout, TM1), lambda n, t: (n, 0, t)),
                pl.BlockSpec((None, Cout, TM2), lambda n, t: (n, 0, t)),
            )),
        compiler_params=cp,
    )(x3, f3, wt_k, wc_k, aff1, aff2)

    if need_mask:
        y1 = y1[:, :, :HW]
        y2 = y2[:, :, :HW2]

    # Epilogue: sub-pixel de-interleave of branch 1 + channel concat (single fused XLA pass).
    # TODO(synk): emit branch 1 already de-interleaved from the kernel (stride-2 lane interleave
    # of the kj sub-pixel columns) and write branch 2 into the [Cout:2Cout] channel slab of one
    # combined output to remove this extra read+write of the full result.
    out1 = jnp.transpose(y1.reshape(N, 2, 2, Cout, H, W),
                         (0, 3, 4, 1, 5, 2)).reshape(N, Cout, 2 * H, 2 * W)
    out2 = y2.reshape(N, Cout, 2 * H, 2 * W)
    # TODO(synk): dropout branch (dp=True) of the reference module is not implemented (module
    # default is dp=False); it would need pltpu.prng_seed / prng_random_bits in pass 2.
    # TODO(synk): single-pass fast path (keep a1/a2 resident in VMEM between stats and normalize)
    # for problems whose activations fit in VMEM would remove the second HBM read of x/f.
    return jnp.concatenate([out1, out2], axis=1)


def reference(x, features, wt, wc, gamma, beta):
    """Pure-JAX reference of the PyTorch forward (train-mode BN, dp=False)."""
    N, Cin, H, W = x.shape
    Cout = wt.shape[1]
    t = jnp.einsum('ncij,cokl->noikjl', x, wt, precision=_HIGHEST)  # transpose conv k=2 s=2
    y1 = t.reshape(N, Cout, 2 * H, 2 * W)
    y2 = jnp.einsum('nchw,oc->nohw', features, wc[:, :, 0, 0], precision=_HIGHEST)
    y = jnp.maximum(jnp.concatenate([y1, y2], axis=1), 0.0)
    mean = y.mean(axis=(0, 2, 3), keepdims=True)
    var = y.var(axis=(0, 2, 3), keepdims=True)
    yhat = (y - mean) / jnp.sqrt(var + EPS)
    return yhat * gamma.reshape(1, -1, 1, 1) + beta.reshape(1, -1, 1, 1)


def _run_case(N, Cin, Cf, Cout, H, W, max_lanes, key):
    k1, k2, k3, k4, k5, k6 = jax.random.split(key, 6)
    x = jax.random.normal(k1, (N, Cin, H, W), jnp.float32)
    features = jax.random.normal(k2, (N, Cf, 2 * H, 2 * W), jnp.float32)
    wt = jax.random.normal(k3, (Cin, Cout, 2, 2), jnp.float32) * 0.1
    wc = jax.random.normal(k4, (Cout, Cf, 1, 1), jnp.float32) * 0.1
    gamma = 1.0 + 0.1 * jax.random.normal(k5, (2 * Cout,), jnp.float32)
    beta = 0.1 * jax.random.normal(k6, (2 * Cout,), jnp.float32)

    fn = jax.jit(functools.partial(unet_up_sample_block, max_lanes=max_lanes))
    out = jax.block_until_ready(fn(x, features, wt, wc, gamma, beta))
    ref = jax.block_until_ready(reference(x, features, wt, wc, gamma, beta))

    assert out.shape == (N, 2 * Cout, 2 * H, 2 * W), out.shape
    err = float(jnp.max(jnp.abs(out - ref)))
    assert jnp.allclose(out, ref, rtol=1e-4, atol=1e-4), err


if __name__ == "__main__":
    key = jax.random.PRNGKey(0)
    key1, key2 = jax.random.split(key)
    # in_channels=4, feature_channels=6, out_channels=4; max_lanes=128 forces T>1 so the
    # multi-tile (cross-chunk) BN statistics path is exercised at these toy shapes.
    _run_case(N=2, Cin=4, Cf=6, Cout=4, H=16, W=16, max_lanes=128, key=key1)
    # non-128-aligned spatial size (HW=144) exercises the zero-pad + masked-statistics path.
    _run_case(N=1, Cin=4, Cf=3, Cout=5, H=12, W=12, max_lanes=None, key=key2)
    print("KERNEL_OK")
</pallas_src>

<mosaic_0001>
module attributes {stable_mosaic.version = 11 : i64} {
  func.func @kernel(%arg0: i32, %arg1: i32, %arg2: memref<1x4x128xf32, #tpu.memory_space<vmem>>, %arg3: memref<1x6x512xf32, #tpu.memory_space<vmem>>, %arg4: memref<16x4xf32, #tpu.memory_space<vmem>>, %arg5: memref<4x6xf32, #tpu.memory_space<vmem>>, %arg6: memref<1x1x2x16x1xf32, #tpu.memory_space<vmem>>, %arg7: memref<1x1x2x4x1xf32, #tpu.memory_space<vmem>>) attributes {dimension_semantics = [#tpu.dimension_semantics<parallel>, #tpu.dimension_semantics<parallel>], iteration_bounds = array<i64: 2, 2>, scalar_prefetch = 0 : i64, scratch_operands = 0 : i64, tpu.core_type = #tpu.core_type<tc>, window_params = [{transform_indices = @transform_0, window_bounds = array<i64: 1, 4, 128>}, {transform_indices = @transform_1, window_bounds = array<i64: 1, 6, 512>}, {pipeline_mode = #tpu.pipeline_mode<synchronous>, transform_indices = @transform_2, window_bounds = array<i64: 16, 4>}, {pipeline_mode = #tpu.pipeline_mode<synchronous>, transform_indices = @transform_3, window_bounds = array<i64: 4, 6>}, {transform_indices = @transform_4, window_bounds = array<i64: 1, 1, 2, 16, 1>}, {transform_indices = @transform_5, window_bounds = array<i64: 1, 1, 2, 4, 1>}]} {
    %c0 = arith.constant 0 : index
    %c0_0 = arith.constant 0 : index
    %0 = vector.load %arg4[%c0, %c0_0] : memref<16x4xf32, #tpu.memory_space<vmem>>, vector<16x4xf32>
    %c0_1 = arith.constant 0 : index
    %c0_2 = arith.constant 0 : index
    %c0_3 = arith.constant 0 : index
    %1 = vector.load %arg2[%c0_1, %c0_2, %c0_3] : memref<1x4x128xf32, #tpu.memory_space<vmem>>, vector<1x4x128xf32>
    %2 = vector.shape_cast %1 : vector<1x4x128xf32> to vector<4x128xf32>
    %cst = arith.constant dense<0.000000e+00> : vector<16x128xf32>
    %3 = tpu.matmul %0, %2, %cst {dimension_numbers = #tpu.dot_dimension_numbers<[1], [0], [0], [1], [0, 0, 1, 1], [], []>, precision = #tpu.contract_precision<fp32>} : vector<16x4xf32>, vector<4x128xf32>, vector<16x128xf32> -> vector<16x128xf32>
    %cst_4 = arith.constant 0.000000e+00 : f32
    %4 = vector.broadcast %cst_4 : f32 to vector<16x128xf32>
    %5 = arith.maximumf %3, %4 : vector<16x128xf32>
    %c0_5 = arith.constant 0 : index
    %c0_6 = arith.constant 0 : index
    %6 = vector.load %arg5[%c0_5, %c0_6] : memref<4x6xf32, #tpu.memory_space<vmem>>, vector<4x6xf32>
    %c0_7 = arith.constant 0 : index
    %c0_8 = arith.constant 0 : index
    %c0_9 = arith.constant 0 : index
    %7 = vector.load %arg3[%c0_7, %c0_8, %c0_9] : memref<1x6x512xf32, #tpu.memory_space<vmem>>, vector<1x6x512xf32>
    %8 = vector.shape_cast %7 : vector<1x6x512xf32> to vector<6x512xf32>
    %cst_10 = arith.constant dense<0.000000e+00> : vector<4x512xf32>
    %9 = tpu.matmul %6, %8, %cst_10 {dimension_numbers = #tpu.dot_dimension_numbers<[1], [0], [0], [1], [0, 0, 1, 1], [], []>, precision = #tpu.contract_precision<fp32>} : vector<4x6xf32>, vector<6x512xf32>, vector<4x512xf32> -> vector<4x512xf32>
    %cst_11 = arith.constant 0.000000e+00 : f32
    %10 = vector.broadcast %cst_11 : f32 to vector<4x512xf32>
    %11 = arith.maximumf %9, %10 : vector<4x512xf32>
    %cst_12 = arith.constant dense<0.000000e+00> : vector<16xf32>
    %12 = vector.multi_reduction <add>, %5, %cst_12 [1] : vector<16x128xf32> to vector<16xf32>
    %13 = vector.shape_cast %12 : vector<16xf32> to vector<16x1xf32>
    %cst_13 = arith.constant dense<0.000000e+00> : vector<4xf32>
    %14 = vector.multi_reduction <add>, %11, %cst_13 [1] : vector<4x512xf32> to vector<4xf32>
    %15 = vector.shape_cast %14 : vector<4xf32> to vector<4x1xf32>
    %cst_14 = arith.constant 7.812500e-03 : f32
    %16 = vector.broadcast %cst_14 : f32 to vector<16x1xf32>
    %17 = arith.mulf %13, %16 : vector<16x1xf32>
    %18 = vector.broadcast %17 : vector<16x1xf32> to vector<16x128xf32>
    %19 = arith.subf %5, %18 : vector<16x128xf32>
    %cst_15 = arith.constant 0.001953125 : f32
    %20 = vector.broadcast %cst_15 : f32 to vector<4x1xf32>
    %21 = arith.mulf %15, %20 : vector<4x1xf32>
    %22 = vector.broadcast %21 : vector<4x1xf32> to vector<4x512xf32>
    %23 = arith.subf %11, %22 : vector<4x512xf32>
    %c0_16 = arith.constant 0 : index
    %c0_17 = arith.constant 0 : index
    %c0_18 = arith.constant 0 : index
    %c0_19 = arith.constant 0 : index
    %c0_20 = arith.constant 0 : index
    %24 = vector.load %arg6[%c0_16, %c0_17, %c0_18, %c0_19, %c0_20] : memref<1x1x2x16x1xf32, #tpu.memory_space<vmem>>, vector<1x1x1x16x1xf32>
    %25 = vector.shape_cast %24 : vector<1x1x1x16x1xf32> to vector<16x1xf32>
    %26 = vector.shape_cast %13 : vector<16x1xf32> to vector<1x1x1x16x1xf32>
    tpu.vector_store %arg6[%c0_16, %c0_17, %c0_18, %c0_19, %c0_20], %26 {strides = array<i32>} : memref<1x1x2x16x1xf32, #tpu.memory_space<vmem>>, vector<1x1x1x16x1xf32>,
    %27 = arith.mulf %19, %19 : vector<16x128xf32>
    %cst_21 = arith.constant dense<0.000000e+00> : vector<16xf32>
    %28 = vector.multi_reduction <add>, %27, %cst_21 [1] : vector<16x128xf32> to vector<16xf32>
    %29 = vector.shape_cast %28 : vector<16xf32> to vector<16x1xf32>
    %c0_22 = arith.constant 0 : index
    %c0_23 = arith.constant 0 : index
    %c1 = arith.constant 1 : index
    %c0_24 = arith.constant 0 : index
    %c0_25 = arith.constant 0 : index
    %30 = vector.load %arg6[%c0_22, %c0_23, %c1, %c0_24, %c0_25] : memref<1x1x2x16x1xf32, #tpu.memory_space<vmem>>, vector<1x1x1x16x1xf32>
    %31 = vector.shape_cast %30 : vector<1x1x1x16x1xf32> to vector<16x1xf32>
    %32 = vector.shape_cast %29 : vector<16x1xf32> to vector<1x1x1x16x1xf32>
    tpu.vector_store %arg6[%c0_22, %c0_23, %c1, %c0_24, %c0_25], %32 {strides = array<i32>} : memref<1x1x2x16x1xf32, #tpu.memory_space<vmem>>, vector<1x1x1x16x1xf32>,
    %c0_26 = arith.constant 0 : index
    %c0_27 = arith.constant 0 : index
    %c0_28 = arith.constant 0 : index
    %c0_29 = arith.constant 0 : index
    %c0_30 = arith.constant 0 : index
    %33 = vector.load %arg7[%c0_26, %c0_27, %c0_28, %c0_29, %c0_30] : memref<1x1x2x4x1xf32, #tpu.memory_space<vmem>>, vector<1x1x1x4x1xf32>
    %34 = vector.shape_cast %33 : vector<1x1x1x4x1xf32> to vector<4x1xf32>
    %35 = vector.shape_cast %15 : vector<4x1xf32> to vector<1x1x1x4x1xf32>
    tpu.vector_store %arg7[%c0_26, %c0_27, %c0_28, %c0_29, %c0_30], %35 {strides = array<i32>} : memref<1x1x2x4x1xf32, #tpu.memory_space<vmem>>, vector<1x1x1x4x1xf32>,
    %36 = arith.mulf %23, %23 : vector<4x512xf32>
    %cst_31 = arith.constant dense<0.000000e+00> : vector<4xf32>
    %37 = vector.multi_reduction <add>, %36, %cst_31 [1] : vector<4x512xf32> to vector<4xf32>
    %38 = vector.shape_cast %37 : vector<4xf32> to vector<4x1xf32>
    %c0_32 = arith.constant 0 : index
    %c0_33 = arith.constant 0 : index
    %c1_34 = arith.constant 1 : index
    %c0_35 = arith.constant 0 : index
    %c0_36 = arith.constant 0 : index
    %39 = vector.load %arg7[%c0_32, %c0_33, %c1_34, %c0_35, %c0_36] : memref<1x1x2x4x1xf32, #tpu.memory_space<vmem>>, vector<1x1x1x4x1xf32>
    %40 = vector.shape_cast %39 : vector<1x1x1x4x1xf32> to vector<4x1xf32>
    %41 = vector.shape_cast %38 : vector<4x1xf32> to vector<1x1x1x4x1xf32>
    tpu.vector_store %arg7[%c0_32, %c0_33, %c1_34, %c0_35, %c0_36], %41 {strides = array<i32>} : memref<1x1x2x4x1xf32, #tpu.memory_space<vmem>>, vector<1x1x1x4x1xf32>,
    return
  }
  func.func @transform_0(%arg0: i32, %arg1: i32) -> (i32, i32, i32) {
    %c0_i32 = arith.constant 0 : i32
    %c0_i32_0 = arith.constant 0 : i32
    return %arg0, %c0_i32, %arg1 : i32, i32, i32
  }
  func.func @transform_1(%arg0: i32, %arg1: i32) -> (i32, i32, i32) {
    %c0_i32 = arith.constant 0 : i32
    %c0_i32_0 = arith.constant 0 : i32
    return %arg0, %c0_i32, %arg1 : i32, i32, i32
  }
  func.func @transform_2(%arg0: i32, %arg1: i32) -> (i32, i32) {
    %c0_i32 = arith.constant 0 : i32
    %c0_i32_0 = arith.constant 0 : i32
    %c0_i32_1 = arith.constant 0 : i32
    return %c0_i32, %c0_i32_0 : i32, i32
  }
  func.func @transform_3(%arg0: i32, %arg1: i32) -> (i32, i32) {
    %c0_i32 = arith.constant 0 : i32
    %c0_i32_0 = arith.constant 0 : i32
    %c0_i32_1 = arith.constant 0 : i32
    return %c0_i32, %c0_i32_0 : i32, i32
  }
  func.func @transform_4(%arg0: i32, %arg1: i32) -> (i32, i32, i32, i32, i32) {
    %c0_i32 = arith.constant 0 : i32
    %c0_i32_0 = arith.constant 0 : i32
    %c0_i32_1 = arith.constant 0 : i32
    %c0_i32_2 = arith.constant 0 : i32
    return %arg0, %arg1, %c0_i32, %c0_i32_0, %c0_i32_1 : i32, i32, i32, i32, i32
  }
  func.func @transform_5(%arg0: i32, %arg1: i32) -> (i32, i32, i32, i32, i32) {
    %c0_i32 = arith.constant 0 : i32
    %c0_i32_0 = arith.constant 0 : i32
    %c0_i32_1 = arith.constant 0 : i32
    %c0_i32_2 = arith.constant 0 : i32
    return %arg0, %arg1, %c0_i32, %c0_i32_0, %c0_i32_1 : i32, i32, i32, i32, i32
  }
}

module attributes {stable_mosaic.version = 11 : i64} {
  func.func @_norm_kernel(%arg0: i32, %arg1: i32, %arg2: memref<1x4x128xf32, #tpu.memory_space<vmem>>, %arg3: memref<1x6x512xf32, #tpu.memory_space<vmem>>, %arg4: memref<16x4xf32, #tpu.memory_space<vmem>>, %arg5: memref<4x6xf32, #tpu.memory_space<vmem>>, %arg6: memref<2x16x1xf32, #tpu.memory_space<vmem>>, %arg7: memref<2x4x1xf32, #tpu.memory_space<vmem>>, %arg8: memref<1x16x128xf32, #tpu.memory_space<vmem>>, %arg9: memref<1x4x512xf32, #tpu.memory_space<vmem>>) attributes {dimension_semantics = [#tpu.dimension_semantics<parallel>, #tpu.dimension_semantics<parallel>], iteration_bounds = array<i64: 2, 2>, scalar_prefetch = 0 : i64, scratch_operands = 0 : i64, tpu.core_type = #tpu.core_type<tc>, window_params = [{transform_indices = @transform_0, window_bounds = array<i64: 1, 4, 128>}, {transform_indices = @transform_1, window_bounds = array<i64: 1, 6, 512>}, {pipeline_mode = #tpu.pipeline_mode<synchronous>, transform_indices = @transform_2, window_bounds = array<i64: 16, 4>}, {pipeline_mode = #tpu.pipeline_mode<synchronous>, transform_indices = @transform_3, window_bounds = array<i64: 4, 6>}, {pipeline_mode = #tpu.pipeline_mode<synchronous>, transform_indices = @transform_4, window_bounds = array<i64: 2, 16, 1>}, {pipeline_mode = #tpu.pipeline_mode<synchronous>, transform_indices = @transform_5, window_bounds = array<i64: 2, 4, 1>}, {transform_indices = @transform_6, window_bounds = array<i64: 1, 16, 128>}, {transform_indices = @transform_7, window_bounds = array<i64: 1, 4, 512>}]} {
    %c0 = arith.constant 0 : index
    %c0_0 = arith.constant 0 : index
    %0 = vector.load %arg4[%c0, %c0_0] : memref<16x4xf32, #tpu.memory_space<vmem>>, vector<16x4xf32>
    %c0_1 = arith.constant 0 : index
    %c0_2 = arith.constant 0 : index
    %c0_3 = arith.constant 0 : index
    %1 = vector.load %arg2[%c0_1, %c0_2, %c0_3] : memref<1x4x128xf32, #tpu.memory_space<vmem>>, vector<1x4x128xf32>
    %2 = vector.shape_cast %1 : vector<1x4x128xf32> to vector<4x128xf32>
    %cst = arith.constant dense<0.000000e+00> : vector<16x128xf32>
    %3 = tpu.matmul %0, %2, %cst {dimension_numbers = #tpu.dot_dimension_numbers<[1], [0], [0], [1], [0, 0, 1, 1], [], []>, precision = #tpu.contract_precision<fp32>} : vector<16x4xf32>, vector<4x128xf32>, vector<16x128xf32> -> vector<16x128xf32>
    %cst_4 = arith.constant 0.000000e+00 : f32
    %4 = vector.broadcast %cst_4 : f32 to vector<16x128xf32>
    %5 = arith.maximumf %3, %4 : vector<16x128xf32>
    %c0_5 = arith.constant 0 : index
    %c0_6 = arith.constant 0 : index
    %6 = vector.load %arg5[%c0_5, %c0_6] : memref<4x6xf32, #tpu.memory_space<vmem>>, vector<4x6xf32>
    %c0_7 = arith.constant 0 : index
    %c0_8 = arith.constant 0 : index
    %c0_9 = arith.constant 0 : index
    %7 = vector.load %arg3[%c0_7, %c0_8, %c0_9] : memref<1x6x512xf32, #tpu.memory_space<vmem>>, vector<1x6x512xf32>
    %8 = vector.shape_cast %7 : vector<1x6x512xf32> to vector<6x512xf32>
    %cst_10 = arith.constant dense<0.000000e+00> : vector<4x512xf32>
    %9 = tpu.matmul %6, %8, %cst_10 {dimension_numbers = #tpu.dot_dimension_numbers<[1], [0], [0], [1], [0, 0, 1, 1], [], []>, precision = #tpu.contract_precision<fp32>} : vector<4x6xf32>, vector<6x512xf32>, vector<4x512xf32> -> vector<4x512xf32>
    %cst_11 = arith.constant 0.000000e+00 : f32
    %10 = vector.broadcast %cst_11 : f32 to vector<4x512xf32>
    %11 = arith.maximumf %9, %10 : vector<4x512xf32>
    %c0_12 = arith.constant 0 : index
    %c0_13 = arith.constant 0 : index
    %c0_14 = arith.constant 0 : index
    %12 = vector.load %arg6[%c0_12, %c0_13, %c0_14] : memref<2x16x1xf32, #tpu.memory_space<vmem>>, vector<1x16x1xf32>
    %13 = vector.shape_cast %12 : vector<1x16x1xf32> to vector<16x1xf32>
    %14 = vector.broadcast %13 : vector<16x1xf32> to vector<16x128xf32>
    %15 = arith.mulf %5, %14 : vector<16x128xf32>
    %c1 = arith.constant 1 : index
    %c0_15 = arith.constant 0 : index
    %c0_16 = arith.constant 0 : index
    %16 = vector.load %arg6[%c1, %c0_15, %c0_16] : memref<2x16x1xf32, #tpu.memory_space<vmem>>, vector<1x16x1xf32>
    %17 = vector.shape_cast %16 : vector<1x16x1xf32> to vector<16x1xf32>
    %18 = vector.broadcast %17 : vector<16x1xf32> to vector<16x128xf32>
    %19 = arith.addf %15, %18 : vector<16x128xf32>
    %c0_17 = arith.constant 0 : index
    %c0_18 = arith.constant 0 : index
    %c0_19 = arith.constant 0 : index
    %20 = vector.load %arg8[%c0_17, %c0_18, %c0_19] : memref<1x16x128xf32, #tpu.memory_space<vmem>>, vector<1x16x128xf32>
    %21 = vector.shape_cast %20 : vector<1x16x128xf32> to vector<16x128xf32>
    %22 = vector.shape_cast %19 : vector<16x128xf32> to vector<1x16x128xf32>
    tpu.vector_store %arg8[%c0_17, %c0_18, %c0_19], %22 {strides = array<i32>} : memref<1x16x128xf32, #tpu.memory_space<vmem>>, vector<1x16x128xf32>,
    %c0_20 = arith.constant 0 : index
    %c0_21 = arith.constant 0 : index
    %c0_22 = arith.constant 0 : index
    %23 = vector.load %arg7[%c0_20, %c0_21, %c0_22] : memref<2x4x1xf32, #tpu.memory_space<vmem>>, vector<1x4x1xf32>
    %24 = vector.shape_cast %23 : vector<1x4x1xf32> to vector<4x1xf32>
    %25 = vector.broadcast %24 : vector<4x1xf32> to vector<4x512xf32>
    %26 = arith.mulf %11, %25 : vector<4x512xf32>
    %c1_23 = arith.constant 1 : index
    %c0_24 = arith.constant 0 : index
    %c0_25 = arith.constant 0 : index
    %27 = vector.load %arg7[%c1_23, %c0_24, %c0_25] : memref<2x4x1xf32, #tpu.memory_space<vmem>>, vector<1x4x1xf32>
    %28 = vector.shape_cast %27 : vector<1x4x1xf32> to vector<4x1xf32>
    %29 = vector.broadcast %28 : vector<4x1xf32> to vector<4x512xf32>
    %30 = arith.addf %26, %29 : vector<4x512xf32>
    %c0_26 = arith.constant 0 : index
    %c0_27 = arith.constant 0 : index
    %c0_28 = arith.constant 0 : index
    %31 = vector.load %arg9[%c0_26, %c0_27, %c0_28] : memref<1x4x512xf32, #tpu.memory_space<vmem>>, vector<1x4x512xf32>
    %32 = vector.shape_cast %31 : vector<1x4x512xf32> to vector<4x512xf32>
    %33 = vector.shape_cast %30 : vector<4x512xf32> to vector<1x4x512xf32>
    tpu.vector_store %arg9[%c0_26, %c0_27, %c0_28], %33 {strides = array<i32>} : memref<1x4x512xf32, #tpu.memory_space<vmem>>, vector<1x4x512xf32>,
    return
  }
  func.func @transform_0(%arg0: i32, %arg1: i32) -> (i32, i32, i32) {
    %c0_i32 = arith.constant 0 : i32
    %c0_i32_0 = arith.constant 0 : i32
    return %arg0, %c0_i32, %arg1 : i32, i32, i32
  }
  func.func @transform_1(%arg0: i32, %arg1: i32) -> (i32, i32, i32) {
    %c0_i32 = arith.constant 0 : i32
    %c0_i32_0 = arith.constant 0 : i32
    return %arg0, %c0_i32, %arg1 : i32, i32, i32
  }
  func.func @transform_2(%arg0: i32, %arg1: i32) -> (i32, i32) {
    %c0_i32 = arith.constant 0 : i32
    %c0_i32_0 = arith.constant 0 : i32
    %c0_i32_1 = arith.constant 0 : i32
    return %c0_i32, %c0_i32_0 : i32, i32
  }
  func.func @transform_3(%arg0: i32, %arg1: i32) -> (i32, i32) {
    %c0_i32 = arith.constant 0 : i32
    %c0_i32_0 = arith.constant 0 : i32
    %c0_i32_1 = arith.constant 0 : i32
    return %c0_i32, %c0_i32_0 : i32, i32
  }
  func.func @transform_4(%arg0: i32, %arg1: i32) -> (i32, i32, i32) {
    %c0_i32 = arith.constant 0 : i32
    %c0_i32_0 = arith.constant 0 : i32
    %c0_i32_1 = arith.constant 0 : i32
    %c0_i32_2 = arith.constant 0 : i32
    return %c0_i32, %c0_i32_0, %c0_i32_1 : i32, i32, i32
  }
  func.func @transform_5(%arg0: i32, %arg1: i32) -> (i32, i32, i32) {
    %c0_i32 = arith.constant 0 : i32
    %c0_i32_0 = arith.constant 0 : i32
    %c0_i32_1 = arith.constant 0 : i32
    %c0_i32_2 = arith.constant 0 : i32
    return %c0_i32, %c0_i32_0, %c0_i32_1 : i32, i32, i32
  }
  func.func @transform_6(%arg0: i32, %arg1: i32) -> (i32, i32, i32) {
    %c0_i32 = arith.constant 0 : i32
    %c0_i32_0 = arith.constant 0 : i32
    return %arg0, %c0_i32, %arg1 : i32, i32, i32
  }
  func.func @transform_7(%arg0: i32, %arg1: i32) -> (i32, i32, i32) {
    %c0_i32 = arith.constant 0 : i32
    %c0_i32_0 = arith.constant 0 : i32
    return %arg0, %c0_i32, %arg1 : i32, i32, i32
  }
}

</mosaic_0001>

<bundles_post_ra>
// kernel: tile.18
= control target key start
LH: loop header
LB: loop body
LE: loop exit
PB: predicated region body
PF: predicated region fallthrough
CT: control target
= control target key end

     0   :  { %s37_s8 = smov 4   ;;  %s38_s9 = smov 8   ;;  %vm7_vm0 = vcmask 31744   ;;  %vm13_vm1 = vcmask 130144   ;;  %vm19_vm2 = vcmask 97344   ;;  %vm25_vm3 = vcmask 64544   ;;  %s55_s0 = inlined_call_operand.vmem [shape: f32[4,4], index: 0, kind: input, shape index: {}]   ;;  %s56_s1 = inlined_call_operand.vmem [shape: f32[1,16], index: 1, kind: output, shape index: {}]  }
   0x1   :  { %v4_v0 = vld [vmem:[%s55_s0] sm:$0xf]  ;;  %s36_s0 = smov 12  }
   0x2   :  { %5 = vst [vmem:[#allocation1] sm:$0xf] %v4_v0 }
   0x9   :  { %v10_v1 = vld [vmem:[#allocation1 + $0x3] sm:$0x1]   ;;  %v22_v2 = vld [vmem:[#allocation1 + $0x1] sm:$0x1]   ;;  %v16_v3 = vld [vmem:[#allocation1 + $0x2] sm:$0x1]  }
   0xa   :  { %11 = vrot.lane.b32.xlu0 %v10_v1, %s36_s0  ;;  %23 = vrot.lane.b32.xlu1 %v22_v2, %s37_s8  ;;  %v6_v4 = vld [vmem:[#allocation1] sm:$0x1]  }
   0xb   :  { %8 = vst.msk [vmem:[#allocation0] sm:$0x1] %vm7_vm0, %v6_v4  }
  0x12   :  { %17 = vrot.lane.b32.xlu0 %v16_v3, %s38_s9 }
  0x7c   :  { %v12_v5 = vpop.permute.xlu0 %11   ;;  %v24_v6 = vpop.permute.xlu1 %23  }
  0x7d   :  { %14 = vst.msk [vmem:[#allocation0] sm:$0x1] %vm13_vm1, %v12_v5  }
  0x84   :  { %v18_v7 = vpop.permute.xlu0 %17  }
  0x85   :  { %20 = vst.msk [vmem:[#allocation0] sm:$0x1] %vm19_vm2, %v18_v7  }
  0x86   :  { %26 = vst.msk [vmem:[#allocation0] sm:$0x1] %vm25_vm3, %v24_v6  }
  0x8d   :  { %v29_v8 = vld [vmem:[#allocation0] sm:$0x1] }
  0x8e   :  { %32 = vst [vmem:[%s56_s1] sm:$0x1] %v29_v8 }

// kernel: unet_up_sample_block.2
= control target key start
LH: loop header
LB: loop body
LE: loop exit
PB: predicated region body
PF: predicated region fallthrough
CT: control target
= control target key end

     0   :  { %s1465_s18 = smov 0   ;;  %s1467_s19 = smov 0   ;;  %s1639_s0 = inlined_call_operand.vmem [shape: f32[2,4,256], index: 0, kind: input, shape index: {}]   ;;  %s1640_s1 = inlined_call_operand.vmem [shape: f32[2,6,1024], index: 1, kind: input, shape index: {}]   ;;  %s1641_s2 = inlined_call_operand.vmem [shape: f32[16,4], index: 2, kind: input, shape index: {}]   ;;  %s1642_s3 = inlined_call_operand.vmem [shape: f32[4,6], index: 3, kind: input, shape index: {}]   ;;  %s1643_s4 = inlined_call_operand.vmem [shape: f32[2,2,2,16,1], index: 4, kind: output, shape index: {0}]   ;;  %s1644_s5 = inlined_call_operand.vmem [shape: f32[2,2,2,4,1], index: 5, kind: output, shape index: {1}]  }
   0x1   :  { %s1469_s20 = smov 0   ;;  %s1471_s21 = smov 0  }
   0x2   :  { %s1473_s22 = smov 0  }
   0x3 LB: > { %s25_s23 = sadd.s32 1, %s1425_s20  ;;  %s28_s24 = sadd.s32 1, %s1429_s21  ;;  %s1433_s22 = sphi %s1473_s22, %s16_s22   ;;  %s1429_s21 = sphi %s1471_s21, %s1648_s21   ;;  %s1425_s20 = sphi %s1469_s20, %s1647_s20   ;;  %s1421_s19 = sphi %s1467_s19, %s1646_s19   ;;  %s1417_s18 = sphi %s1465_s18, %s1645_s18  }
   0x4   : > { %p26_p0 = scmp.ge.s32.totalorder %s25_s23, 2  ;;  %p1338_p1 = scmp.ge.s32.totalorder %s1433_s22, 1 }
   0x5   : > { %p228_p2 = scmp.lt.s32.totalorder %s1433_s22, 5 }
   0x6   : > { %s1650_s23 = smov (%p26_p0, %s25_s23), 0  ;;  %s1652_s24 = smov (!%p26_p0, %s28_s24), %s1429_s21 }
   0x7   : > { %p229_p3 = pnand %p1338_p1, %p228_p2  ;;  %p30_p4 = scmp.ge.s32.totalorder %s1652_s24, 2 }
   0x8   : > { %p281_p5 = scmp.lt.s32.totalorder (!%p229_p3), %s1421_s19, 1  ;;  %p283_p6 = scmp.lt.s32.totalorder (!%p229_p3), %s1417_s18, 1 }
   0x9   : > { %s1654_s24 = smov (%p30_p4, %s1652_s24), 0  ;;  %232 = sbr.rel (%p229_p3) target bundleno = 480 (0x1e0), region = 36 }
   0xa   : > { %s1341_s27 = sshll.u32 (!%p229_p3), %s1417_s18, 2 }
   0xb   : > { %p292_p7 = scmp.lt.s32.totalorder (!%p229_p3), %s1341_s27, 7 }
   0xe   : > { %v317_v0 = vld [vmem:[%s1641_s2] sm:$0xff]  ;;  %vm320_vm0 = vcmask 31744   ;;  %v318_v2 = vld [vmem:[%s1641_s2 + $0x8] sm:$0xff]  ;;  %s1656_s19 = smov (!%p281_p5, %s1421_s19), 1  ;;  %s1658_s18 = smov (!%p283_p6, %s1417_s18), 1  ;;  %vm515_vm1 = vcmask 48128  }
   0xf   : > { %v322_v1 = vsel %vm320_vm0, %v317_v0, 0  ;;  %v325_v4 = vsel %vm320_vm0, %v318_v2, 0  ;;  %s1339_s30 = sshll.u32 %s1656_s19, 1  ;;  %v510_v8 = vld [vmem:[%s1642_s3] sm:$0xf]  ;;  %vm327_vm2 = vcmask 1043456  }
  0x10   : > { %v1507_v3 = vand.u32 4294901760, %v322_v1  ;;  %v1512_v5 = vand.u32 4294901760, %v325_v4  ;;  %s286_s6 = sadd.s32 %s1339_s30, %s1658_s18  ;;  %s1342_s13 = sshll.u32 %s1656_s19, 3  ;;  %v517_v12 = vsel %vm515_vm1, %v510_v8, 0  ;;  %vm519_vm3 = vcmask 1045504  }
  0x11   : > { %s1340_s9 = sshll.u32 %s286_s6, 2  ;;  %s1660_s27 = smov (!%p292_p7, %s1341_s27), 7  ;;  %v1528_v17 = vand.u32 4294901760, %v517_v12  ;;  %vm1142_vm4 = vcmask 7168   ;;  %vm1154_vm5 = vcmask 3072  }
  0x12   : > { %v349_v6 = vsub.f32 %v322_v1, %v1507_v3  ;;  %v357_v7 = vsub.f32 %v325_v4, %v1512_v5  ;;  %s288_s12 = scalar_lea.vmem %s1639_s0, %s1340_s9  ;;  %s295_s14 = sadd.s32 %s1342_s13, %s1660_s27 }
  0x13   : > { %v319_v10 = vld [vmem:[%s288_s12] sm:$0xf]  ;;  %s1343_s15 = sshll.u32 %s295_s14, 3  ;;  %v1540_v26 = vsub.f32 %v517_v12, %v1528_v17  ;;  %s1344_s26 = sshll.u32 %s1658_s18, 2 }
  0x14   : > { %v350_v9 = vand.u32 4294901760, %v349_v6  ;;  %v329_v13 = vsel %vm327_vm2, %v319_v10, 0  ;;  %v358_v14 = vand.u32 4294901760, %v357_v7  ;;  %s1533_s25 = scalar_lea.vmem %s1640_s1, %s1343_s15  ;;  %s305_s27 = sadd.s32 %s1344_s26, %s1342_s13 }
  0x15   : > { %v346_v15 = vand.u32 4294901760, %v329_v13  ;;  %v511_v19 = vld [vmem:[%s1533_s25] sm:$0x3f]  ;;  %v512_v21 = vld [vmem:[%s1533_s25 + $0x8] sm:$0x3f]  ;;  %v1543_v34 = vand.u32 4294901760, %v1540_v26 }
  0x16   : > { %v351_v11 = vsub.f32 %v349_v6, %v350_v9  ;;  %v359_v20 = vsub.f32 %v357_v7, %v358_v14  ;;  %v521_v22 = vsel %vm519_vm3, %v511_v19, 0  ;;  %v524_v24 = vsel %vm519_vm3, %v512_v21, 0  ;;  %v513_v42 = vld [vmem:[%s1533_s25 + $0x10] sm:$0x3f]  ;;  %v514_v43 = vld [vmem:[%s1533_s25 + $0x18] sm:$0x3f] }
  0x17   : > { %347 = vmatpush.msra.mxu0 %v346_v15  ;;  %v381_v18 = vsub.f32 %v329_v13, %v346_v15  ;;  %440 = vmatpush.msra.mxu3 %v346_v15  ;;  %v547_v25 = vand.u32 4294901760, %v521_v22  ;;  %v693_v27 = vand.u32 4294901760, %v524_v24  ;;  %v552_v38 = vsub.f32 %v1540_v26, %v1543_v34  ;;  %s1346_s28 = sshll.u32 %s305_s27, 3  ;;  %s1347_s7 = sshll.u32 %s1658_s18, 1 }
  0x18   : > { %v352_v16 = vand.u32 4294901760, %v351_v11  ;;  %444 = vmatmul.f32.vlgmr.msra.gmra.mxu3 %v350_v9  ;;  %v360_v30 = vand.u32 4294901760, %v359_v20  ;;  %v527_v44 = vsel %vm519_vm3, %v513_v42, 0  ;;  %v530_v45 = vsel %vm519_vm3, %v514_v43, 0  ;;  %s1601_s6 = scalar_lea.vmem %s1643_s4, %s1346_s28  ;;  %s1348_s8 = sshll.u32 %s1656_s19, 2 }
  0x19   : > { %412 = vmatpush.msra.mxu2 %v381_v18  ;;  %v382_v23 = vand.u32 4294901760, %v381_v18  ;;  %v574_v29 = vsub.f32 %v521_v22, %v547_v25  ;;  %v720_v31 = vsub.f32 %v524_v24, %v693_v27  ;;  %v553_v40 = vand.u32 4294901760, %v552_v38  ;;  %s314_s9 = sadd.s32 %s1348_s8, %s1347_s7 }
  0x1a   : > { %353 = vmatmul.f32.vlgmr.msra.gmra.mxu0 %v352_v16  ;;  %415 = vmatmul.f32.vlgmr.msra.gmra.mxu2 %v349_v6  ;;  %v839_v46 = vand.u32 4294901760, %v527_v44  ;;  %v985_v47 = vand.u32 4294901760, %v530_v45  ;;  %s1349_s10 = sshll.u32 %s314_s9, 2 }
  0x1b   : > { %v383_v28 = vsub.f32 %v381_v18, %v382_v23  ;;  %472 = vmatpush.msrb.mxu0 %v382_v23  ;;  %548 = vmatpush.msrb.mxu2 %v547_v25  ;;  %v575_v33 = vand.u32 4294901760, %v574_v29  ;;  %v721_v35 = vand.u32 4294901760, %v720_v31  ;;  %s316_s13 = scalar_lea.vmem %s1644_s5, %s1349_s10 }
  0x1c   : > { %v866_v48 = vsub.f32 %v527_v44, %v839_v46  ;;  %v1012_v49 = vsub.f32 %v530_v45, %v985_v47 }
  0x1d   : > { %v384_v32 = vand.u32 4294901760, %v383_v28  ;;  %601 = vmatpush.msra.mxu2 %v574_v29  ;;  %v576_v36 = vsub.f32 %v574_v29, %v575_v33  ;;  %650 = vmatpush.msra.mxu0 %v575_v33  ;;  %v722_v39 = vsub.f32 %v720_v31, %v721_v35 }
  0x1e   : > { %v867_v50 = vand.u32 4294901760, %v866_v48  ;;  %v1013_v51 = vand.u32 4294901760, %v1012_v49 }
  0x1f   : > { %385 = vmatpush.msra.mxu1 %v384_v32  ;;  %v577_v37 = vand.u32 4294901760, %v576_v36  ;;  %v723_v41 = vand.u32 4294901760, %v722_v39 }
  0x20   : > { %387 = vmatmul.f32.vlgmr.msra.gmra.mxu1 %v1507_v3  ;;  %450 = vmatmul.f32.gmra.mxu3 %v358_v14  ;;  %v868_v52 = vsub.f32 %v866_v48, %v867_v50  ;;  %v1014_v53 = vsub.f32 %v1012_v49, %v1013_v51 }
  0x21   : > { %498 = vmatpush.msrb.mxu1 %v346_v15  ;;  %578 = vmatpush.msrb.mxu3 %v577_v37 }
  0x22   : > { %361 = vmatmul.f32.gmra.mxu0 %v360_v30  ;;  %420 = vmatmul.f32.gmra.mxu2 %v357_v7  ;;  %v869_v54 = vand.u32 4294901760, %v868_v52  ;;  %v1015_v55 = vand.u32 4294901760, %v1014_v53 }
  0x23   : > { %672 = vmatpush.msra.mxu1 %v547_v25  ;;  %624 = vmatpush.msra.mxu3 %v547_v25 }
  0x28   : > { %391 = vmatmul.f32.gmra.mxu1 %v1512_v5  ;;  %580 = vmatmul.f32.vlgmr.msrb.gmra.mxu3 %v1528_v17 }
  0x29   : > { %724 = vmatpush.msrb.mxu3 %v723_v41 }
  0x2a   : > { %474 = vmatmul.f32.vlgmr.msrb.gmra.mxu0 %v1507_v3  ;;  %554 = vmatmul.f32.vlgmr.msrb.gmra.mxu2 %v553_v40 }
  0x2b   : > { %747 = vmatpush.msrb.mxu0 %v720_v31  ;;  %694 = vmatpush.msrb.mxu2 %v693_v27 }
  0x30   : > { %500 = vmatmul.f32.vlgmr.msrb.gmra.mxu1 %v1507_v3  ;;  %628 = vmatmul.f32.vlgmr.msra.gmra.mxu3 %v1543_v34 }
  0x31   : > { %770 = vmatpush.msrb.mxu1 %v693_v27  ;;  %818 = vmatpush.msra.mxu3 %v693_v27 }
  0x32   : > { %478 = vmatmul.f32.gmra.mxu0 %v1512_v5  ;;  %604 = vmatmul.f32.vlgmr.msra.gmra.mxu2 %v1540_v26 }
  0x33   : > { %796 = vmatpush.msra.mxu2 %v721_v35 }
  0x38   : > { %504 = vmatmul.f32.gmra.mxu1 %v1512_v5  ;;  %726 = vmatmul.f32.vlgmr.msrb.gmra.mxu3 %v1528_v17 }
  0x39   : > { %916 = vmatpush.msrb.mxu3 %v839_v46 }
  0x3a   : > { %652 = vmatmul.f32.vlgmr.msra.gmra.mxu0 %v1528_v17  ;;  %700 = vmatmul.f32.vlgmr.msrb.gmra.mxu2 %v553_v40 }
  0x3b   : > { %840 = vmatpush.msra.mxu0 %v839_v46  ;;  %893 = vmatpush.msrb.mxu2 %v866_v48 }
  0x40   : > { %674 = vmatmul.f32.vlgmr.msra.gmra.mxu1 %v1528_v17  ;;  %820 = vmatmul.f32.vlgmr.msra.gmra.mxu3 %v1528_v17 }
  0x41   : > { %870 = vmatpush.msra.mxu1 %v869_v54  ;;  %1016 = vmatpush.msra.mxu3 %v1015_v55 }
  0x42   : > { %750 = vmatmul.f32.vlgmr.msrb.gmra.mxu0 %v1540_v26  ;;  %798 = vmatmul.f32.vlgmr.msra.gmra.mxu2 %v1528_v17 }
  0x43   : > { %942 = vmatpush.msrb.mxu0 %v867_v50  ;;  %986 = vmatpush.msra.mxu2 %v985_v47 }
  0x48   : > { %774 = vmatmul.f32.vlgmr.msrb.gmra.mxu1 %v1543_v34  ;;  %920 = vmatmul.f32.vlgmr.msrb.gmra.mxu3 %v1543_v34 }
  0x49   : > { %964 = vmatpush.msrb.mxu1 %v839_v46  ;;  %1110 = vmatpush.msrb.mxu3 %v985_v47 }
  0x4a   : > { %846 = vmatmul.f32.vlgmr.msra.gmra.mxu0 %v553_v40  ;;  %896 = vmatmul.f32.vlgmr.msrb.gmra.mxu2 %v1540_v26 }
  0x4b   : > { %1039 = vmatpush.msra.mxu0 %v1012_v49  ;;  %1088 = vmatpush.msrb.mxu2 %v1013_v51 }
  0x50   : > { %872 = vmatmul.f32.vlgmr.msra.gmra.mxu1 %v1528_v17  ;;  %1018 = vmatmul.f32.vlgmr.msra.gmra.mxu3 %v1528_v17 }
  0x51   : > { %1062 = vmatpush.msra.mxu1 %v985_v47 }
  0x52   : > { %944 = vmatmul.f32.vlgmr.msrb.gmra.mxu0 %v1528_v17  ;;  %992 = vmatmul.f32.vlgmr.msra.gmra.mxu2 %v553_v40 }
  0x58   : > { %966 = vmatmul.f32.vlgmr.msrb.gmra.mxu1 %v1528_v17  ;;  %1112 = vmatmul.f32.vlgmr.msrb.gmra.mxu3 %v1528_v17 }
  0x5a   : > { %1042 = vmatmul.f32.vlgmr.msra.gmra.mxu0 %v1540_v26  ;;  %1090 = vmatmul.f32.vlgmr.msrb.gmra.mxu2 %v1528_v17 }
  0x60   : > { %1066 = vmatmul.f32.vlgmr.msra.gmra.mxu1 %v1543_v34 }
  0x97   : > { %v354_v56 = vpop.f32.mrf.mxu0 }
  0x9b   : > { %v445_v57 = vpop.f32.mrf.mxu3 }
  0x9d   : > { %v388_v59 = vpop.f32.mrf.mxu1  ;;  %v416_v61 = vpop.f32.mrf.mxu2 }
  0x9e   : > { %v389_v60 = vadd.f32 %v388_v59, %v354_v56 }
  0x9f   : > { %v362_v58 = vpop.f32.mrf.mxu0 }
  0xa0   : > { %v417_v62 = vadd.f32 %v416_v61, %v389_v60 }
  0xa2   : > { %v1577_v63 = vadd.f32 %v445_v57, %v417_v62 }
  0xa3   : > { %v451_v0 = vpop.f32.mrf.mxu3 }
  0xa5   : > { %v392_v1 = vpop.f32.mrf.mxu1  ;;  %v421_v3 = vpop.f32.mrf.mxu2 }
  0xa6   : > { %v393_v4 = vadd.f32 %v392_v1, %v362_v58 }
  0xa7   : > { %v1579_v2 = vpop.f32.mrf.mxu0 }
  0xa8   : > { %v422_v8 = vadd.f32 %v421_v3, %v393_v4 }
  0xaa   : > { %v452_v10 = vadd.f32 %v451_v0, %v422_v8 }
  0xab   : > { %v581_v5 = vpop.f32.mrf.mxu3 }
  0xad   : > { %v1581_v7 = vpop.f32.mrf.mxu1  ;;  %v555_v9 = vpop.f32.mrf.mxu2 }
  0xae   : > { %v582_v29 = vadd.f32 %v581_v5, %v555_v9 }
  0xaf   : > { %v479_v6 = vpop.f32.mrf.mxu0 }
  0xb0   : > { %v480_v11 = vadd.f32 %v479_v6, %v452_v10  ;;  %v476_v6 = vadd.f32 %v1579_v2, %v1577_v63 }
  0xb2   : > { %v502_v8 = vadd.f32 %v1581_v7, %v476_v6 }
  0xb3   : > { %v629_v12 = vpop.f32.mrf.mxu3 }
  0xb4   : > { %v508_v9 = vmax.f32 %v502_v8, 0.0 }
  0xb5   : > { %v505_v13 = vpop.f32.mrf.mxu1  ;;  %v605_v16 = vpop.f32.mrf.mxu2 }
  0xb6   : > { %v1583_v15 = vadd.f32 %v505_v13, %v480_v11  ;;  %v606_v34 = vadd.f32 %v605_v16, %v582_v29 }
  0xb7   : > { %v653_v14 = vpop.f32.mrf.mxu0 }
  0xb8   : > { %v509_v17 = vmax.f32 %v1583_v15, 0.0  ;;  %v630_v38 = vadd.f32 %v629_v12, %v606_v34 }
  0xba   : > { %1122 = vadd.xlane.f32.xlu1 %v509_v17  ;;  %v654_v44 = vadd.f32 %v653_v14, %v630_v38 }
  0xbb   : > { %v727_v18 = vpop.f32.mrf.mxu3 }
  0xbd   : > { %v675_v19 = vpop.f32.mrf.mxu1  ;;  %v701_v21 = vpop.f32.mrf.mxu2 }
  0xbe   : > { %v728_v26 = vadd.f32 %v727_v18, %v701_v21  ;;  %v676_v48 = vadd.f32 %v675_v19, %v654_v44 }
  0xbf   : > { %v751_v20 = vpop.f32.mrf.mxu0 }
  0xc0   : > { %v752_v30 = vadd.f32 %v751_v20, %v728_v26  ;;  %v1116_v53 = vmax.f32 %v676_v48, 0.0 }
  0xc2   : > { %v1124_v60 = vsel %vm327_vm2, %v1116_v53, 0.0 }
  0xc3   : > { %v821_v22 = vpop.f32.mrf.mxu3 }
  0xc5   : > { %v775_v23 = vpop.f32.mrf.mxu1  ;;  %v799_v25 = vpop.f32.mrf.mxu2 }
  0xc6   : > { %v776_v35 = vadd.f32 %v775_v23, %v752_v30 }
  0xc7   : > { %v847_v24 = vpop.f32.mrf.mxu0 }
  0xc8   : > { %v800_v39 = vadd.f32 %v799_v25, %v776_v35 }
  0xca   : > { %v822_v45 = vadd.f32 %v821_v22, %v800_v39 }
  0xcb   : > { %v921_v27 = vpop.f32.mrf.mxu3 }
  0xcc   : > { %v1117_v50 = vmax.f32 %v822_v45, 0.0 }
  0xcd   : > { %v873_v28 = vpop.f32.mrf.mxu1  ;;  %v897_v32 = vpop.f32.mrf.mxu2 }
  0xce   : > { %v874_v31 = vadd.f32 %v873_v28, %v847_v24  ;;  %v1125_v58 = vsel %vm327_vm2, %v1117_v50, 0.0 }
  0xcf   : > { %v945_v33 = vpop.f32.mrf.mxu0  ;;  %v1126_v0 = vadd.f32 %v1125_v58, %v1124_v60 }
  0xd0   : > { %v898_v36 = vadd.f32 %v897_v32, %v874_v31 }
  0xd2   : > { %v922_v37 = vadd.f32 %v921_v27, %v898_v36 }
  0xd3   : > { %v1019_v41 = vpop.f32.mrf.mxu3 }
  0xd4   : > { %v946_v42 = vadd.f32 %v945_v33, %v922_v37 }
  0xd5   : > { %v967_v40 = vpop.f32.mrf.mxu1  ;;  %v993_v43 = vpop.f32.mrf.mxu2 }
  0xd6   : > { %v1020_v46 = vadd.f32 %v1019_v41, %v993_v43  ;;  %v968_v49 = vadd.f32 %v967_v40, %v946_v42 }
  0xd7   : > { %v1043_v47 = vpop.f32.mrf.mxu0 }
  0xd8   : > { %v1044_v51 = vadd.f32 %v1043_v47, %v1020_v46  ;;  %v1118_v54 = vmax.f32 %v968_v49, 0.0 }
  0xda   : > { %v1127_v62 = vsel %vm327_vm2, %v1118_v54, 0.0 }
  0xdb   : > { %v1113_v57 = vpop.f32.mrf.mxu3  ;;  %v1128_v3 = vadd.f32 %v1127_v62, %v1126_v0 }
  0xdd   : > { %v1067_v52 = vpop.f32.mrf.mxu1  ;;  %v1091_v56 = vpop.f32.mrf.mxu2 }
  0xde   : > { %v1068_v55 = vadd.f32 %v1067_v52, %v1044_v51 }
  0xe0   : > { %v1092_v59 = vadd.f32 %v1091_v56, %v1068_v55 }
  0xe2   : > { %v1114_v61 = vadd.f32 %v1113_v57, %v1092_v59 }
  0xe4   : > { %v1119_v1 = vmax.f32 %v1114_v61, 0.0 }
  0xe6   : > { %v1129_v4 = vsel %vm327_vm2, %v1119_v1, 0.0 }
  0xe7   : > { %v1130_v5 = vadd.f32 %v1129_v4, %v1128_v3 }
  0xe9   : > { %1131 = vadd.xlane.f32.xlu0 %v1130_v5 }
  0xf1   : > { %1120 = vadd.xlane.f32.xlu0 %v508_v9 }
 0x12d   : > { %v1123_v10 = vpop.xlane.xlu1 %1122 }
 0x12e   : > { %v1134_v63 = vmul.f32 0.0078125, %v1123_v10  ;;  %1144 = vst.msk [vmem:[%s1601_s6 + $0x8] sm:$0xff] %vm1142_vm4, %v1123_v10 }
 0x130   : > { %v1136_v2 = vsub.f32 %v509_v17, %v1134_v63 }
 0x132   : > { %v1146_v7 = vmul.f32 %v1136_v2, %v1136_v2 }
 0x134   : > { %1149 = vadd.xlane.f32.xlu2 %v1146_v7 }
 0x15c   : > { %v1132_v11 = vpop.xlane.xlu0 %1131 }
 0x15d   : > { %v1137_v12 = vmul.f32 0.001953125, %v1132_v11  ;;  %1155 = vst.msk [vmem:[%s316_s13] sm:$0xf] %vm1154_vm5, %v1132_v11 }
 0x15f   : > { %v1138_v13 = vsub.f32 %v1116_v53, %v1137_v12  ;;  %v1139_v14 = vsub.f32 %v1117_v50, %v1137_v12  ;;  %v1140_v15 = vsub.f32 %v1118_v54, %v1137_v12  ;;  %v1141_v16 = vsub.f32 %v1119_v1, %v1137_v12 }
 0x161   : > { %v1156_v17 = vmul.f32 %v1138_v13, %v1138_v13  ;;  %v1157_v18 = vmul.f32 %v1139_v14, %v1139_v14  ;;  %v1158_v19 = vmul.f32 %v1140_v15, %v1140_v15  ;;  %v1159_v20 = vmul.f32 %v1141_v16, %v1141_v16 }
 0x163   : > { %v1160_v21 = vsel %vm327_vm2, %v1156_v17, 0.0  ;;  %v1161_v22 = vsel %vm327_vm2, %v1157_v18, 0.0  ;;  %v1163_v26 = vsel %vm327_vm2, %v1158_v19, 0.0  ;;  %v1165_v28 = vsel %vm327_vm2, %v1159_v20, 0.0 }
 0x164   : > { %v1121_v23 = vpop.xlane.xlu0 %1120  ;;  %v1162_v24 = vadd.f32 %v1161_v22, %v1160_v21 }
 0x165   : > { %v1133_v25 = vmul.f32 0.0078125, %v1121_v23  ;;  %1143 = vst.msk [vmem:[%s1601_s6] sm:$0xff] %vm1142_vm4, %v1121_v23 }
 0x166   : > { %v1164_v27 = vadd.f32 %v1163_v26, %v1162_v24 }
 0x167   : > { %v1135_v29 = vsub.f32 %v508_v9, %v1133_v25 }
 0x168   : > { %v1166_v30 = vadd.f32 %v1165_v28, %v1164_v27 }
 0x169   : > { %v1145_v31 = vmul.f32 %v1135_v29, %v1135_v29 }
 0x16a   : > { %1167 = vadd.xlane.f32.xlu2 %v1166_v30 }
 0x16b   : > { %1147 = vadd.xlane.f32.xlu1 %v1145_v31 }
 0x1a7   : > { %v1150_v32 = vpop.xlane.xlu2 %1149 }
 0x1a8   : > { %1351 = vst.msk [vmem:[%s1601_s6 + $0x18] sm:$0xff] %vm1142_vm4, %v1150_v32 }
 0x1dd   : > { %v1168_v33 = vpop.xlane.xlu2 %1167 }
 0x1de   : > { %1352 = vst.msk [vmem:[%s316_s13 + $0x4] sm:$0xf] %vm1154_vm5, %v1168_v33  ;;  %v1148_v34 = vpop.xlane.xlu1 %1147 }
 0x1df   : > { %1350 = vst.msk [vmem:[%s1601_s6 + $0x10] sm:$0xff] %vm1142_vm4, %v1148_v34 }
 0x1e0 PF: > { %s16_s22 = sadd.s32 1, %s1433_s22   ;;  %s1645_s18 = smov %s1425_s20 }
 0x1e1   : > { %p13_p8 = scmp.ge.s32.totalorder %s16_s22, 6   ;;  %s1646_s19 = smov %s1429_s21 }
 0x1e2   : > { %s1647_s20 = smov %s1650_s23  ;;  %s1648_s21 = smov %s1654_s24 }
 0x1e3   :  { %15 = sbr.rel (!%p13_p8) target bundleno = 3 (0x3), region = 83 }

// kernel: unet_up_sample_block.3
= control target key start
LH: loop header
LB: loop body
LE: loop exit
PB: predicated region body
PF: predicated region fallthrough
CT: control target
= control target key end

     0   :  { %s1590_s24 = smov 0   ;;  %s1592_s25 = smov 0   ;;  %s1790_s0 = inlined_call_operand.vmem [shape: f32[2,4,256], index: 0, kind: input, shape index: {}]   ;;  %s1791_s1 = inlined_call_operand.vmem [shape: f32[2,6,1024], index: 1, kind: input, shape index: {}]   ;;  %s1792_s2 = inlined_call_operand.vmem [shape: f32[16,4], index: 2, kind: input, shape index: {}]   ;;  %s1793_s3 = inlined_call_operand.vmem [shape: f32[4,6], index: 3, kind: input, shape index: {}]   ;;  %s1794_s4 = inlined_call_operand.vmem [shape: f32[2,16,1], index: 4, kind: input, shape index: {}]   ;;  %s1795_s5 = inlined_call_operand.vmem [shape: f32[2,4,1], index: 5, kind: input, shape index: {}]   ;;  %s1796_s6 = inlined_call_operand.vmem [shape: f32[2,16,256], index: 6, kind: output, shape index: {0}]   ;;  %s1797_s7 = inlined_call_operand.vmem [shape: f32[2,4,1024], index: 7, kind: output, shape index: {1}]  }
   0x1   :  { %s1594_s26 = smov 0   ;;  %s1596_s27 = smov 0  }
   0x2   :  { %s1598_s28 = smov 0   ;;  %s1600_s29 = smov 0  }
   0x3   :  { %s1602_s30 = smov 0  }
   0x4 LB: > { %s27_s8 = sadd.s32 1, %s1539_s28  ;;  %s30_s9 = sadd.s32 1, %s1543_s29  ;;  %s1547_s30 = sphi %s1602_s30, %s18_s30   ;;  %s1543_s29 = sphi %s1600_s29, %s1804_s29   ;;  %s1539_s28 = sphi %s1598_s28, %s1803_s28   ;;  %s1535_s27 = sphi %s1596_s27, %s1802_s27   ;;  %s1531_s26 = sphi %s1594_s26, %s1801_s26   ;;  %s1527_s25 = sphi %s1592_s25, %s1800_s25   ;;  %s1523_s24 = sphi %s1590_s24, %s1799_s24  }
   0x5   : > { %p28_p0 = scmp.ge.s32.totalorder %s27_s8, 2  ;;  %s1411_s10 = sadd.s32 4294967295, %s1547_s30  }
   0x6   : > { %p189_p1 = scmp.ne.s32.totalorder %s1527_s25, %s1523_s24  ;;  %p190_p2 = scmp.eq.s32.totalorder %s1411_s10, 3 }
   0x7   : > { %s1806_s8 = smov (%p28_p0, %s27_s8), 0  ;;  %s1808_s9 = smov (!%p28_p0, %s30_s9), %s1543_s29 }
   0x8   : > { %s175_s11 = ssub.s32 %s1539_s28, %s1806_s8  ;;  %p32_p3 = scmp.ge.s32.totalorder %s1808_s9, 2 }
   0x9   : > { %p1415_p4 = scmp.ge.s32.totalorder %s1547_s30, 1  ;;  %p1636_p5 = por %p190_p2, %p189_p1 }
   0xa   : > { %p278_p6 = scmp.lt.s32.totalorder %s1547_s30, 5  ;;  %s1810_s9 = smov (%p32_p3, %s1808_s9), 0 }
   0xb   : > { %s174_s13 = ssub.s32 %s1543_s29, %s1810_s9  ;;  %s179_s15 = sadd.s32 1, %s1527_s25 }
   0xc   : > { %p279_p7 = pnand %p1415_p4, %p278_p6  ;;  %s176_s14 = sor.u32 %s175_s11, %s174_s13 }
   0xd   : > { %p177_p8 = scmp.eq.s32.totalorder %s176_s14, 0  ;;  %p330_p9 = scmp.lt.s32.totalorder (!%p279_p7), %s1535_s27, 1 }
   0xe   : > { %282 = sbr.rel (%p279_p7) target bundleno = 244 (0xf4), region = 44  ;;  %p332_p10 = scmp.lt.s32.totalorder (!%p279_p7), %s1531_s26, 1 }
   0xf   : > { %s1647_s16 = scalar_select %p177_p8, %s1527_s25, %s179_s15  }
  0x10   : > { %s1419_s19 = sshll.u32 (!%p279_p7), %s1531_s26, 2  ;;  %s316_s14 = sand.u32 (!%p279_p7), 1, %s1523_s24  }
  0x11   : > { %p341_p11 = scmp.lt.s32.totalorder (!%p279_p7), %s1419_s19, 7 }
  0x13   : > { %v358_v0 = vld [vmem:[%s1792_s2] sm:$0xff]  ;;  %vm361_vm0 = vcmask 31744   ;;  %v359_v2 = vld [vmem:[%s1792_s2 + $0x8] sm:$0xff]  ;;  %s331_s22 = scalar_select %p330_p9, %s1535_s27, 1  ;;  %vm556_vm1 = vcmask 48128   ;;  %vm368_vm2 = vcmask 1043456  }
  0x14   : > { %v363_v1 = vsel %vm361_vm0, %v358_v0, 0  ;;  %v366_v4 = vsel %vm361_vm0, %v359_v2, 0  ;;  %s333_s23 = scalar_select %p332_p10, %s1531_s26, 1  ;;  %v551_v8 = vld [vmem:[%s1793_s3] sm:$0xf]  ;;  %vm560_vm3 = vcmask 1045504  }
  0x15   : > { %v1659_v3 = vand.u32 4294901760, %v363_v1  ;;  %v1662_v5 = vand.u32 4294901760, %v366_v4  ;;  %s1417_s10 = sshll.u32 %s331_s22, 1  ;;  %s1420_s21 = sshll.u32 %s331_s22, 3  ;;  %v558_v12 = vsel %vm556_vm1, %v551_v8, 0  ;;  %v1161_v28 = vld [vmem:[%s1794_s4] sm:$0xff] }
  0x16   : > { %s335_s11 = sadd.s32 %s1417_s10, %s333_s23  ;;  %s1812_s19 = smov (!%p341_p11, %s1419_s19), 7  ;;  %v1676_v17 = vand.u32 4294901760, %v558_v12  ;;  %v1549_v30 = vmov 0   ;;  %v1162_v42 = vld [vmem:[%s1794_s4 + $0x8] sm:$0xff]  ;;  %v1192_v46 = vld [vmem:[%s1795_s5] sm:$0xf] }
  0x17   : > { %v390_v6 = vsub.f32 %v363_v1, %v1659_v3  ;;  %v398_v7 = vsub.f32 %v366_v4, %v1662_v5  ;;  %s1418_s15 = sshll.u32 %s335_s11, 2  ;;  %s1673_s23 = sadd.s32 %s1420_s21, %s1812_s19  ;;  %1491 = vset.pattern.permute.xlu1 %v1549_v30  ;;  %1490 = vset.pattern.permute.xlu0 %v1549_v30  ;;  %v1427_v52 = vld [vmem:[%s1795_s5 + $0x4] sm:$0xf]  ;;  %v1425_v57 = vld [vmem:[%s1794_s4 + $0x10] sm:$0xff]  ;;  %v1426_v62 = vld [vmem:[%s1794_s4 + $0x18] sm:$0xff] }
  0x18   : > { %s337_s20 = scalar_lea.vmem %s1790_s0, %s1418_s15  ;;  %s1421_s10 = sshll.u32 %s1673_s23, 3  ;;  %v1688_v26 = vsub.f32 %v558_v12, %v1676_v17  ;;  %1165 = vperm.xlu1 %1491, %v1161_v28   ;;  %1492 = vset.pattern.permute.xlu2 %v1549_v30 }
  0x19   : > { %v391_v9 = vand.u32 4294901760, %v390_v6  ;;  %v360_v10 = vld [vmem:[%s337_s20] sm:$0xf]  ;;  %v399_v14 = vand.u32 4294901760, %v398_v7  ;;  %s1681_s13 = scalar_lea.vmem %s1791_s1, %s1421_s10  ;;  %1195 = vperm.xlu0 %1490, %v1192_v46   ;;  %1180 = vperm.xlu2 %1492, %v1425_v57   ;;  %s1416_s15 = sshll.u32 %s316_s14, 4 }
  0x1a   : > { %v370_v13 = vsel %vm368_vm2, %v360_v10, 0  ;;  %v552_v19 = vld [vmem:[%s1681_s13] sm:$0x3f]  ;;  %v553_v21 = vld [vmem:[%s1681_s13 + $0x8] sm:$0x3f]  ;;  %v1694_v36 = vand.u32 4294901760, %v1688_v26 }
  0x1b   : > { %v392_v11 = vsub.f32 %v390_v6, %v391_v9  ;;  %v387_v15 = vand.u32 4294901760, %v370_v13  ;;  %v400_v20 = vsub.f32 %v398_v7, %v399_v14  ;;  %v562_v22 = vsel %vm560_vm3, %v552_v19, 0  ;;  %v554_v45 = vld [vmem:[%s1681_s13 + $0x10] sm:$0x3f]  ;;  %v555_v47 = vld [vmem:[%s1681_s13 + $0x18] sm:$0x3f] }
  0x1c   : > { %v565_v24 = vsel %vm560_vm3, %v553_v21, 0  ;;  %v588_v25 = vand.u32 4294901760, %v562_v22  ;;  %v593_v40 = vsub.f32 %v1688_v26, %v1694_v36  ;;  %v568_v48 = vsel %vm560_vm3, %v554_v45, 0  ;;  %s1750_s17 = scalar_lea.vmem [#allocation2], %s1416_s15  ;;  %s1424_s24 = sshll.u32 %s1673_s23, 2 }
  0x1d   : > { %v393_v16 = vand.u32 4294901760, %v392_v11  ;;  %388 = vmatpush.msra.mxu0 %v387_v15  ;;  %v422_v18 = vsub.f32 %v370_v13, %v387_v15  ;;  %481 = vmatpush.msra.mxu3 %v387_v15  ;;  %v734_v27 = vand.u32 4294901760, %v565_v24  ;;  %v401_v32 = vand.u32 4294901760, %v400_v20  ;;  %s356_s21 = scalar_lea.vmem %s1797_s7, %s1424_s24  ;;  %s1429_s23 = sshll.u32 (%p1636_p5), %s1535_s27, 2 }
  0x1e   : > { %485 = vmatmul.f32.vlgmr.msra.gmra.mxu3 %v391_v9  ;;  %v615_v31 = vsub.f32 %v562_v22, %v588_v25  ;;  %v1702_v43 = vand.u32 4294901760, %v593_v40  ;;  %v571_v49 = vsel %vm560_vm3, %v555_v47, 0  ;;  %v880_v50 = vand.u32 4294901760, %v568_v48  ;;  %s1242_s10 = sadd.s32 (%p1636_p5), %s1531_s26, %s1429_s23 }
  0x1f   : > { %394 = vmatmul.f32.vlgmr.msra.gmra.mxu0 %v393_v16  ;;  %453 = vmatpush.msra.mxu2 %v422_v18  ;;  %v423_v23 = vand.u32 4294901760, %v422_v18  ;;  %v761_v33 = vsub.f32 %v565_v24, %v734_v27  ;;  %v1026_v51 = vand.u32 4294901760, %v571_v49  ;;  %s1430_s22 = sshll.u32 (%p1636_p5), %s1242_s10, 3 }
  0x20   : > { %456 = vmatmul.f32.vlgmr.msra.gmra.mxu2 %v390_v6  ;;  %v616_v35 = vand.u32 4294901760, %v615_v31  ;;  %1170 = vperm.xlu1 %1491, %v1162_v42   ;;  %v907_v53 = vsub.f32 %v568_v48, %v880_v50  ;;  %s1244_s19 = scalar_lea.vmem (%p1636_p5), %s1796_s6, %s1430_s22 }
  0x21   : > { %v424_v29 = vsub.f32 %v422_v18, %v423_v23  ;;  %513 = vmatpush.msrb.mxu0 %v423_v23  ;;  %589 = vmatpush.msrb.mxu2 %v588_v25  ;;  %v762_v37 = vand.u32 4294901760, %v761_v33  ;;  %v1053_v54 = vsub.f32 %v571_v49, %v1026_v51 }
  0x22   : > { %v617_v38 = vsub.f32 %v615_v31, %v616_v35  ;;  %1206 = vperm.xlu0 %1490, %v1427_v52   ;;  %v908_v55 = vand.u32 4294901760, %v907_v53  ;;  %1185 = vperm.xlu2 %1492, %v1426_v62  }
  0x23   : > { %v425_v34 = vand.u32 4294901760, %v424_v29  ;;  %642 = vmatpush.msra.mxu2 %v615_v31  ;;  %691 = vmatpush.msra.mxu0 %v616_v35  ;;  %v763_v41 = vsub.f32 %v761_v33, %v762_v37  ;;  %v1054_v56 = vand.u32 4294901760, %v1053_v54 }
  0x24   : > { %v618_v39 = vand.u32 4294901760, %v617_v38  ;;  %v909_v58 = vsub.f32 %v907_v53, %v908_v55 }
  0x25   : > { %426 = vmatpush.msra.mxu1 %v425_v34  ;;  %v764_v44 = vand.u32 4294901760, %v763_v41  ;;  %v1055_v59 = vsub.f32 %v1053_v54, %v1054_v56 }
  0x26   : > { %428 = vmatmul.f32.vlgmr.msra.gmra.mxu1 %v1659_v3  ;;  %491 = vmatmul.f32.gmra.mxu3 %v399_v14  ;;  %v910_v60 = vand.u32 4294901760, %v909_v58 }
  0x27   : > { %402 = vmatmul.f32.gmra.mxu0 %v401_v32  ;;  %539 = vmatpush.msrb.mxu1 %v387_v15  ;;  %v1056_v61 = vand.u32 4294901760, %v1055_v59 }
  0x28   : > { %461 = vmatmul.f32.gmra.mxu2 %v398_v7  ;;  %619 = vmatpush.msrb.mxu3 %v618_v39 }
  0x29   : > { %713 = vmatpush.msra.mxu1 %v588_v25 }
  0x2a   : > { %665 = vmatpush.msra.mxu3 %v588_v25 }
  0x2e   : > { %432 = vmatmul.f32.gmra.mxu1 %v1662_v5  ;;  %621 = vmatmul.f32.vlgmr.msrb.gmra.mxu3 %v1676_v17 }
  0x2f   : > { %515 = vmatmul.f32.vlgmr.msrb.gmra.mxu0 %v1659_v3  ;;  %765 = vmatpush.msrb.mxu3 %v764_v44 }
  0x30   : > { %788 = vmatpush.msrb.mxu0 %v761_v33  ;;  %595 = vmatmul.f32.vlgmr.msrb.gmra.mxu2 %v1702_v43 }
  0x31   : > { %735 = vmatpush.msrb.mxu2 %v734_v27 }
  0x36   : > { %541 = vmatmul.f32.vlgmr.msrb.gmra.mxu1 %v1659_v3  ;;  %669 = vmatmul.f32.vlgmr.msra.gmra.mxu3 %v1694_v36 }
  0x37   : > { %519 = vmatmul.f32.gmra.mxu0 %v1662_v5  ;;  %811 = vmatpush.msrb.mxu1 %v734_v27 }
  0x38   : > { %645 = vmatmul.f32.vlgmr.msra.gmra.mxu2 %v1688_v26  ;;  %859 = vmatpush.msra.mxu3 %v734_v27 }
  0x39   : > { %837 = vmatpush.msra.mxu2 %v762_v37 }
  0x3e   : > { %545 = vmatmul.f32.gmra.mxu1 %v1662_v5  ;;  %767 = vmatmul.f32.vlgmr.msrb.gmra.mxu3 %v1676_v17 }
  0x3f   : > { %693 = vmatmul.f32.vlgmr.msra.gmra.mxu0 %v1676_v17  ;;  %957 = vmatpush.msrb.mxu3 %v880_v50 }
  0x40   : > { %881 = vmatpush.msra.mxu0 %v880_v50  ;;  %741 = vmatmul.f32.vlgmr.msrb.gmra.mxu2 %v1702_v43 }
  0x41   : > { %934 = vmatpush.msrb.mxu2 %v907_v53 }
  0x46   : > { %715 = vmatmul.f32.vlgmr.msra.gmra.mxu1 %v1676_v17  ;;  %861 = vmatmul.f32.vlgmr.msra.gmra.mxu3 %v1676_v17 }
  0x47   : > { %791 = vmatmul.f32.vlgmr.msrb.gmra.mxu0 %v1688_v26  ;;  %911 = vmatpush.msra.mxu1 %v910_v60 }
  0x48   : > { %839 = vmatmul.f32.vlgmr.msra.gmra.mxu2 %v1676_v17  ;;  %983 = vmatpush.msrb.mxu0 %v908_v55 }
  0x49   : > { %1027 = vmatpush.msra.mxu2 %v1026_v51  ;;  %1057 = vmatpush.msra.mxu3 %v1056_v61 }
  0x4e   : > { %815 = vmatmul.f32.vlgmr.msrb.gmra.mxu1 %v1694_v36  ;;  %961 = vmatmul.f32.vlgmr.msrb.gmra.mxu3 %v1694_v36 }
  0x4f   : > { %887 = vmatmul.f32.vlgmr.msra.gmra.mxu0 %v1702_v43  ;;  %1005 = vmatpush.msrb.mxu1 %v880_v50 }
  0x50   : > { %937 = vmatmul.f32.vlgmr.msrb.gmra.mxu2 %v1688_v26  ;;  %1080 = vmatpush.msra.mxu0 %v1053_v54 }
  0x51   : > { %1129 = vmatpush.msrb.mxu2 %v1054_v56  ;;  %1151 = vmatpush.msrb.mxu3 %v1026_v51 }
  0x56   : > { %913 = vmatmul.f32.vlgmr.msra.gmra.mxu1 %v1676_v17  ;;  %1059 = vmatmul.f32.vlgmr.msra.gmra.mxu3 %v1676_v17 }
  0x57   : > { %985 = vmatmul.f32.vlgmr.msrb.gmra.mxu0 %v1676_v17  ;;  %1103 = vmatpush.msra.mxu1 %v1026_v51 }
  0x58   : > { %1033 = vmatmul.f32.vlgmr.msra.gmra.mxu2 %v1702_v43 }
  0x5e   : > { %1007 = vmatmul.f32.vlgmr.msrb.gmra.mxu1 %v1676_v17  ;;  %1153 = vmatmul.f32.vlgmr.msrb.gmra.mxu3 %v1676_v17 }
  0x5f   : > { %1083 = vmatmul.f32.vlgmr.msra.gmra.mxu0 %v1688_v26 }
  0x60   : > { %1131 = vmatmul.f32.vlgmr.msrb.gmra.mxu2 %v1676_v17 }
  0x66   : > { %1107 = vmatmul.f32.vlgmr.msra.gmra.mxu1 %v1694_v36 }
  0x73   : > { %v1181_v20 = vpop.permute.xlu2 %1180 }
  0x7c   : > { %v1186_v33 = vpop.permute.xlu2 %1185 }
  0x8a   : > { %v1166_v14 = vpop.permute.xlu1 %1165 }
  0x8b   : > { %v1196_v45 = vpop.permute.xlu0 %1195 }
  0x92   : > { %v1171_v31 = vpop.permute.xlu1 %1170 }
  0x9c   : > { %v395_v63 = vpop.f32.mrf.mxu0 }
  0xa1   : > { %v486_v0 = vpop.f32.mrf.mxu3 }
  0xa3   : > { %v429_v2 = vpop.f32.mrf.mxu1  ;;  %v457_v3 = vpop.f32.mrf.mxu2 }
  0xa4   : > { %v403_v1 = vpop.f32.mrf.mxu0  ;;  %v430_v4 = vadd.f32 %v429_v2, %v395_v63  ;;  %v1207_v63 = vpop.permute.xlu0 %1206 }
  0xa6   : > { %v458_v8 = vadd.f32 %v457_v3, %v430_v4 }
  0xa8   : > { %v487_v10 = vadd.f32 %v486_v0, %v458_v8 }
  0xa9   : > { %v492_v5 = vpop.f32.mrf.mxu3 }
  0xab   : > { %v433_v6 = vpop.f32.mrf.mxu1  ;;  %v462_v9 = vpop.f32.mrf.mxu2 }
  0xac   : > { %v516_v7 = vpop.f32.mrf.mxu0  ;;  %v434_v11 = vadd.f32 %v433_v6, %v403_v1 }
  0xad   : > { %v517_v12 = vadd.f32 %v516_v7, %v487_v10 }
  0xae   : > { %v463_v17 = vadd.f32 %v462_v9, %v434_v11 }
  0xb0   : > { %v493_v22 = vadd.f32 %v492_v5, %v463_v17 }
  0xb1   : > { %v622_v13 = vpop.f32.mrf.mxu3 }
  0xb3   : > { %v542_v16 = vpop.f32.mrf.mxu1  ;;  %v596_v19 = vpop.f32.mrf.mxu2 }
  0xb4   : > { %v520_v15 = vpop.f32.mrf.mxu0  ;;  %v543_v18 = vadd.f32 %v542_v16, %v517_v12  ;;  %v623_v34 = vadd.f32 %v622_v13, %v596_v19 }
  0xb5   : > { %v521_v24 = vadd.f32 %v520_v15, %v493_v22 }
  0xb6   : > { %v549_v21 = vmax.f32 %v543_v18, 0.0 }
  0xb8   : > { %v1173_v23 = vmul.f32 %v1166_v14, %v549_v21 }
  0xb9   : > { %v670_v26 = vpop.f32.mrf.mxu3 }
  0xba   : > { %v1188_v25 = vadd.f32 %v1181_v20, %v1173_v23 }
  0xbb   : > { %v546_v27 = vpop.f32.mrf.mxu1  ;;  %v646_v30 = vpop.f32.mrf.mxu2 }
  0xbc   : > { %v694_v28 = vpop.f32.mrf.mxu0  ;;  %1190 = vst [vmem:[%s1750_s17] sm:$0xff] %v1188_v25  ;;  %v547_v29 = vadd.f32 %v546_v27, %v521_v24  ;;  %v647_v36 = vadd.f32 %v646_v30, %v623_v34 }
  0xbe   : > { %v550_v32 = vmax.f32 %v547_v29, 0.0  ;;  %v671_v42 = vadd.f32 %v670_v26, %v647_v36 }
  0xc0   : > { %v1174_v35 = vmul.f32 %v1171_v31, %v550_v32  ;;  %v695_v44 = vadd.f32 %v694_v28, %v671_v42 }
  0xc1   : > { %v768_v38 = vpop.f32.mrf.mxu3 }
  0xc2   : > { %v1189_v37 = vadd.f32 %v1186_v33, %v1174_v35 }
  0xc3   : > { %v716_v39 = vpop.f32.mrf.mxu1  ;;  %v742_v41 = vpop.f32.mrf.mxu2  ;;  %v1275_v29 = vld [vmem:[%s1750_s17] sm:$0xff] (%p1636_p5) }
  0xc4   : > { %v792_v40 = vpop.f32.mrf.mxu0  ;;  %1191 = vst [vmem:[%s1750_s17 + $0x8] sm:$0xff] %v1189_v37  ;;  %v769_v43 = vadd.f32 %v768_v38, %v742_v41  ;;  %v717_v50 = vadd.f32 %v716_v39, %v695_v44 }
  0xc5   : > { %1276 = vst [vmem:[%s1244_s19] sm:$0xff] (%p1636_p5), %v1275_v29 }
  0xc6   : > { %v793_v46 = vadd.f32 %v792_v40, %v769_v43  ;;  %v1157_v54 = vmax.f32 %v717_v50, 0.0 }
  0xc8   : > { %v1198_v59 = vmul.f32 %v1196_v45, %v1157_v54 }
  0xc9   : > { %v862_v47 = vpop.f32.mrf.mxu3 }
  0xca   : > { %v1209_v2 = vadd.f32 %v1207_v63, %v1198_v59 }
  0xcb   : > { %v816_v48 = vpop.f32.mrf.mxu1  ;;  %v840_v52 = vpop.f32.mrf.mxu2  ;;  %v1277_v30 = vld [vmem:[%s1750_s17 + $0x8] sm:$0xff] (%p1636_p5) }
  0xcc   : > { %v888_v49 = vpop.f32.mrf.mxu0  ;;  %v817_v51 = vadd.f32 %v816_v48, %v793_v46  ;;  %1278 = vst [vmem:[%s1244_s19 + $0x10] sm:$0xff] (%p1636_p5), %v1277_v30 }
  0xce   : > { %v841_v53 = vadd.f32 %v840_v52, %v817_v51 }
  0xd0   : > { %v863_v55 = vadd.f32 %v862_v47, %v841_v53 }
  0xd1   : > { %v962_v57 = vpop.f32.mrf.mxu3 }
  0xd2   : > { %v1158_v56 = vmax.f32 %v863_v55, 0.0 }
  0xd3   : > { %v914_v58 = vpop.f32.mrf.mxu1  ;;  %v938_v62 = vpop.f32.mrf.mxu2 }
  0xd4   : > { %v1199_v60 = vmul.f32 %v1196_v45, %v1158_v56  ;;  %v915_v61 = vadd.f32 %v914_v58, %v888_v49  ;;  %v986_v0 = vpop.f32.mrf.mxu0 }
  0xd6   : > { %v1210_v1 = vadd.f32 %v1207_v63, %v1199_v60  ;;  %v939_v4 = vadd.f32 %v938_v62, %v915_v61 }
  0xd8   : > { %v1217_v3 = vrot.slane %v1210_v1, 4  ;;  %v963_v8 = vadd.f32 %v962_v57, %v939_v4 }
  0xd9   : > { %v1060_v7 = vpop.f32.mrf.mxu3 }
  0xda   : > { %v1219_v5 = vsel %vm368_vm2, %v1209_v2, %v1217_v3  ;;  %v987_v12 = vadd.f32 %v986_v0, %v963_v8 }
  0xdb   : > { %1223 = vst [vmem:[%s356_s21] sm:$0xff] %v1219_v5  ;;  %v1008_v6 = vpop.f32.mrf.mxu1  ;;  %v1034_v9 = vpop.f32.mrf.mxu2 }
  0xdc   : > { %v1061_v10 = vadd.f32 %v1060_v7, %v1034_v9  ;;  %v1084_v11 = vpop.f32.mrf.mxu0  ;;  %v1009_v15 = vadd.f32 %v1008_v6, %v987_v12 }
  0xde   : > { %v1085_v13 = vadd.f32 %v1084_v11, %v1061_v10  ;;  %v1159_v20 = vmax.f32 %v1009_v15, 0.0 }
  0xe0   : > { %v1200_v23 = vmul.f32 %v1196_v45, %v1159_v20 }
  0xe1   : > { %v1154_v18 = vpop.f32.mrf.mxu3 }
  0xe2   : > { %v1211_v26 = vadd.f32 %v1207_v63, %v1200_v23 }
  0xe3   : > { %v1108_v14 = vpop.f32.mrf.mxu1  ;;  %v1132_v17 = vpop.f32.mrf.mxu2 }
  0xe4   : > { %v1109_v16 = vadd.f32 %v1108_v14, %v1085_v13 }
  0xe6   : > { %v1133_v19 = vadd.f32 %v1132_v17, %v1109_v16 }
  0xe8   : > { %v1155_v21 = vadd.f32 %v1154_v18, %v1133_v19 }
  0xea   : > { %v1160_v22 = vmax.f32 %v1155_v21, 0.0 }
  0xec   : > { %v1201_v24 = vmul.f32 %v1196_v45, %v1160_v22 }
  0xee   : > { %v1212_v25 = vadd.f32 %v1207_v63, %v1201_v24 }
  0xef   : > { %1240 = sbr.rel (!%p1636_p5) target bundleno = 244 (0xf4), region = 48 }
  0xf0   : > { %v1218_v27 = vrot.slane %v1212_v25, 4 }
  0xf2   : > { %v1220_v28 = vsel %vm368_vm2, %v1211_v26, %v1218_v27 }
  0xf3   : > { %1224 = vst [vmem:[%s356_s21 + $0x8] sm:$0xff] %v1220_v28 }
  0xf4 PF: > { %s18_s30 = sadd.s32 1, %s1547_s30   ;;  %s1799_s24 = smov %s1527_s25 }
  0xf5   : > { %p15_p12 = scmp.ge.s32.totalorder %s18_s30, 6   ;;  %s1800_s25 = smov %s1647_s16 }
  0xf6   : > { %s1801_s26 = smov %s1539_s28  ;;  %s1802_s27 = smov %s1543_s29 }
  0xf7   : > { %s1803_s28 = smov %s1806_s8  ;;  %s1804_s29 = smov %s1810_s9 }
  0xf8   :  { %17 = sbr.rel (!%p15_p12) target bundleno = 4 (0x4), region = 129 }

</bundles_post_ra>
